<compile_context>
chip_gen: v7x
topology: tpu7x:2x2x1
jax: 0.10.0
libtpu: 0.0.40
codegen_flags: <defaults>
</compile_context>

<pallas_src>
import jax
import jax.numpy as jnp
from jax.experimental import pallas as pl
from jax.experimental.pallas import tpu as pltpu


# ---------------------------------------------------------------------------
# Kernels
# ---------------------------------------------------------------------------

def _one_hot_counts(x_ref, off_ref, vocab_size):
    """counts[b, v] = #{f : x[b, f] + offsets[f] == v}  (f32, accumulated i32).

    x_ref   : (tile_b, F) int32 raw field indices
    off_ref : (F,)        int32 SMEM scalar-prefetch ref
    """
    tile_b, num_fields = x_ref.shape
    viota = jax.lax.broadcasted_iota(jnp.int32, (1, vocab_size), 1)   # (1, V)
    counts = jnp.zeros((tile_b, vocab_size), jnp.int32)
    for f in range(num_fields):                 # static unroll, F is small
        idx_f = x_ref[:, f:f + 1] + off_ref[f]  # (tile_b, 1) + SMEM scalar
        counts = counts + (idx_f == viota).astype(jnp.int32)
    return counts.astype(jnp.float32)           # one convert, post-loop


def _feature_linear_d1_kernel(off_ref, x_ref, trow_ref, bias_ref, out_ref):
    """out_dim == 1 path: VPU compares + XLU lane-reduce (no N=1 MXU matmul).

    off_ref  : (F,)        int32  SMEM
    x_ref    : (tile_b, F) int32
    trow_ref : (1, V)      f32    embedding column laid out on lanes
    bias_ref : (1, 1)      f32
    out_ref  : (tile_b, 1) f32
    """
    vocab_size = trow_ref.shape[1]
    counts = _one_hot_counts(x_ref, off_ref, vocab_size)      # (tile_b, V)
    weighted = counts * trow_ref[...]                          # (tile_b, V)
    out_ref[...] = jnp.sum(weighted, axis=1, keepdims=True) + bias_ref[...]


def _feature_linear_mxu_kernel(off_ref, x_ref, table_ref, bias_ref, out_ref):
    """General out_dim path: counts @ table on the MXU.

    off_ref   : (F,)        int32  SMEM
    x_ref     : (tile_b, F) int32
    table_ref : (V, D)      f32    (full table resident in VMEM; V is tiny)
    bias_ref  : (1, D)      f32
    out_ref   : (tile_b, D) f32
    """
    vocab_size = table_ref.shape[0]
    counts = _one_hot_counts(x_ref, off_ref, vocab_size)      # (tile_b, V)
    out = jnp.dot(counts, table_ref[...], preferred_element_type=jnp.float32)
    out_ref[...] = out + bias_ref[...]


# ---------------------------------------------------------------------------
# Wrapper
# ---------------------------------------------------------------------------

def _round_up(n, m):
    return ((n + m - 1) // m) * m


def feature_linear(x, table, bias, offsets, *, tile_b=512):
    """x: (B, F) int, table: (V, D) f32, bias: (D,) f32, offsets: (F,) int."""
    B, F = x.shape
    V, D = table.shape

    x = x.astype(jnp.int32)
    offsets = offsets.astype(jnp.int32)
    table = table.astype(jnp.float32)
    bias = bias.astype(jnp.float32)

    # Large tiles amortize per-grid-step overhead; cap near B/2 (rounded to 8)
    # so >= 2 "parallel" blocks exist whenever possible (feeds both v7x TCs).
    tb = max(8, min(tile_b, _round_up(_round_up(B, 2) // 2, 8)))
    num_tiles = pl.cdiv(B, tb)

    params = pltpu.CompilerParams(dimension_semantics=("parallel",))

    if D == 1:
        # Embedding column as a (1, V) lane row; tiny one-time parameter reshape.
        trow = table.reshape(1, V)
        bias2 = bias.reshape(1, 1)
        grid_spec = pltpu.PrefetchScalarGridSpec(
            num_scalar_prefetch=1,
            grid=(num_tiles,),
            in_specs=[
                pl.BlockSpec((tb, F), lambda i, off: (i, 0)),   # raw x tile
                pl.BlockSpec((1, V), lambda i, off: (0, 0)),    # table row
                pl.BlockSpec((1, 1), lambda i, off: (0, 0)),    # bias
            ],
            out_specs=pl.BlockSpec((tb, 1), lambda i, off: (i, 0)),
        )
        return pl.pallas_call(
            _feature_linear_d1_kernel,
            out_shape=jax.ShapeDtypeStruct((B, 1), jnp.float32),
            grid_spec=grid_spec,
            compiler_params=params,
        )(offsets, x, trow, bias2)

    bias2 = bias.reshape(1, D)
    grid_spec = pltpu.PrefetchScalarGridSpec(
        num_scalar_prefetch=1,
        grid=(num_tiles,),
        in_specs=[
            pl.BlockSpec((tb, F), lambda i, off: (i, 0)),       # raw x tile
            pl.BlockSpec((V, D), lambda i, off: (0, 0)),        # whole table
            pl.BlockSpec((1, D), lambda i, off: (0, 0)),        # bias
        ],
        out_specs=pl.BlockSpec((tb, D), lambda i, off: (i, 0)),
    )
    return pl.pallas_call(
        _feature_linear_mxu_kernel,
        out_shape=jax.ShapeDtypeStruct((B, D), jnp.float32),
        grid_spec=grid_spec,
        compiler_params=params,
    )(offsets, x, table, bias2)


# ---------------------------------------------------------------------------
# Demo / correctness check
# ---------------------------------------------------------------------------

if __name__ == "__main__":
    key = jax.random.PRNGKey(0)

    # FeatureLinear(field_dims=(5, 7, 11, 9))
    field_dims = (5, 7, 11, 9)
    V = int(sum(field_dims))                     # 32
    F = len(field_dims)                          # 4
    B = 37                                       # exercises 2 tiles + ragged tail

    offsets = jnp.asarray(
        [0] + list(jnp.cumsum(jnp.asarray(field_dims))[:-1]), dtype=jnp.int32)

    k_tab1, k_tab2, k_bias, *k_fields = jax.random.split(key, F + 3)

    # deterministic inputs: per-field index in [0, field_dims[f])
    cols = [jax.random.randint(k_fields[f], (B,), 0, field_dims[f], dtype=jnp.int32)
            for f in range(F)]
    x = jnp.stack(cols, axis=1)                  # (B, F) int32

    def ref_fn(x, table, bias, offsets):
        idx = (x + offsets[None, :]).astype(jnp.int32)
        return jnp.take(table, idx, axis=0).sum(axis=1) + bias[None, :]

    # --- out_dim == 1 (DeepFM default): VPU/XLU path -------------------------
    D1 = 1
    table1 = jax.random.normal(k_tab1, (V, D1), dtype=jnp.float32)
    bias1 = jnp.zeros((D1,), dtype=jnp.float32)
    out1 = jax.block_until_ready(feature_linear(x, table1, bias1, offsets))
    ref1 = ref_fn(x, table1, bias1, offsets)
    assert out1.shape == (B, D1)
    assert jnp.allclose(out1, ref1, atol=1e-5, rtol=1e-5)

    # --- out_dim > 1: MXU path ------------------------------------------------
    D2 = 8
    table2 = jax.random.normal(k_tab2, (V, D2), dtype=jnp.float32)
    bias2 = 0.1 * jax.random.normal(k_bias, (D2,), dtype=jnp.float32)
    out2 = jax.block_until_ready(feature_linear(x, table2, bias2, offsets))
    ref2 = ref_fn(x, table2, bias2, offsets)
    assert out2.shape == (B, D2)
    assert jnp.allclose(out2, ref2, atol=1e-4, rtol=1e-4)

    print("KERNEL_OK")
</pallas_src>

<mosaic_0001>
module attributes {stable_mosaic.version = 11 : i64} {
  func.func @_feature_linear_d1_kernel(%arg0: i32, %arg1: memref<4xi32, #tpu.memory_space<smem>>, %arg2: memref<24x4xi32, #tpu.memory_space<vmem>>, %arg3: memref<1x32xf32, #tpu.memory_space<vmem>>, %arg4: memref<1x1xf32, #tpu.memory_space<vmem>>, %arg5: memref<24x1xf32, #tpu.memory_space<vmem>>) attributes {dimension_semantics = [#tpu.dimension_semantics<parallel>], iteration_bounds = array<i64: 2>, scalar_prefetch = 1 : i64, scratch_operands = 0 : i64, tpu.core_type = #tpu.core_type<tc>, window_params = [{transform_indices = @transform_0, window_bounds = array<i64: 24, 4>}, {pipeline_mode = #tpu.pipeline_mode<synchronous>, transform_indices = @transform_1, window_bounds = array<i64: 1, 32>}, {pipeline_mode = #tpu.pipeline_mode<synchronous>, transform_indices = @transform_2, window_bounds = array<i64: 1, 1>}, {transform_indices = @transform_3, window_bounds = array<i64: 24, 1>}]} {
    %0 = tpu.iota {dimensions = array<i32: 1>} : vector<1x32xi32>
    %c0_i32 = arith.constant 0 : i32
    %1 = vector.broadcast %c0_i32 : i32 to vector<24x32xi32>
    %c0 = arith.constant 0 : index
    %c0_0 = arith.constant 0 : index
    %2 = vector.load %arg2[%c0, %c0_0] : memref<24x4xi32, #tpu.memory_space<vmem>>, vector<24x1xi32>
    %c0_1 = arith.constant 0 : index
    %3 = memref.load %arg1[%c0_1] : memref<4xi32, #tpu.memory_space<smem>>
    %4 = vector.broadcast %3 : i32 to vector<24x1xi32>
    %5 = arith.addi %2, %4 : vector<24x1xi32>
    %6 = vector.broadcast %5 : vector<24x1xi32> to vector<24x32xi32>
    %7 = vector.broadcast %0 : vector<1x32xi32> to vector<24x32xi32>
    %8 = arith.cmpi eq, %6, %7 : vector<24x32xi32>
    %9 = arith.extui %8 : vector<24x32xi1> to vector<24x32xi32>
    %10 = arith.addi %1, %9 : vector<24x32xi32>
    %c0_2 = arith.constant 0 : index
    %c1 = arith.constant 1 : index
    %11 = vector.load %arg2[%c0_2, %c1] : memref<24x4xi32, #tpu.memory_space<vmem>>, vector<24x1xi32>
    %c1_3 = arith.constant 1 : index
    %12 = memref.load %arg1[%c1_3] : memref<4xi32, #tpu.memory_space<smem>>
    %13 = vector.broadcast %12 : i32 to vector<24x1xi32>
    %14 = arith.addi %11, %13 : vector<24x1xi32>
    %15 = vector.broadcast %14 : vector<24x1xi32> to vector<24x32xi32>
    %16 = vector.broadcast %0 : vector<1x32xi32> to vector<24x32xi32>
    %17 = arith.cmpi eq, %15, %16 : vector<24x32xi32>
    %18 = arith.extui %17 : vector<24x32xi1> to vector<24x32xi32>
    %19 = arith.addi %10, %18 : vector<24x32xi32>
    %c0_4 = arith.constant 0 : index
    %c2 = arith.constant 2 : index
    %20 = vector.load %arg2[%c0_4, %c2] : memref<24x4xi32, #tpu.memory_space<vmem>>, vector<24x1xi32>
    %c2_5 = arith.constant 2 : index
    %21 = memref.load %arg1[%c2_5] : memref<4xi32, #tpu.memory_space<smem>>
    %22 = vector.broadcast %21 : i32 to vector<24x1xi32>
    %23 = arith.addi %20, %22 : vector<24x1xi32>
    %24 = vector.broadcast %23 : vector<24x1xi32> to vector<24x32xi32>
    %25 = vector.broadcast %0 : vector<1x32xi32> to vector<24x32xi32>
    %26 = arith.cmpi eq, %24, %25 : vector<24x32xi32>
    %27 = arith.extui %26 : vector<24x32xi1> to vector<24x32xi32>
    %28 = arith.addi %19, %27 : vector<24x32xi32>
    %c0_6 = arith.constant 0 : index
    %c3 = arith.constant 3 : index
    %29 = vector.load %arg2[%c0_6, %c3] : memref<24x4xi32, #tpu.memory_space<vmem>>, vector<24x1xi32>
    %c3_7 = arith.constant 3 : index
    %30 = memref.load %arg1[%c3_7] : memref<4xi32, #tpu.memory_space<smem>>
    %31 = vector.broadcast %30 : i32 to vector<24x1xi32>
    %32 = arith.addi %29, %31 : vector<24x1xi32>
    %33 = vector.broadcast %32 : vector<24x1xi32> to vector<24x32xi32>
    %34 = vector.broadcast %0 : vector<1x32xi32> to vector<24x32xi32>
    %35 = arith.cmpi eq, %33, %34 : vector<24x32xi32>
    %36 = arith.extui %35 : vector<24x32xi1> to vector<24x32xi32>
    %37 = arith.addi %28, %36 : vector<24x32xi32>
    %38 = arith.sitofp %37 : vector<24x32xi32> to vector<24x32xf32>
    %c0_8 = arith.constant 0 : index
    %c0_9 = arith.constant 0 : index
    %39 = vector.load %arg3[%c0_8, %c0_9] : memref<1x32xf32, #tpu.memory_space<vmem>>, vector<1x32xf32>
    %40 = vector.broadcast %39 : vector<1x32xf32> to vector<24x32xf32>
    %41 = arith.mulf %38, %40 : vector<24x32xf32>
    %cst = arith.constant dense<0.000000e+00> : vector<24xf32>
    %42 = vector.multi_reduction <add>, %41, %cst [1] : vector<24x32xf32> to vector<24xf32>
    %43 = vector.shape_cast %42 : vector<24xf32> to vector<24x1xf32>
    %c0_10 = arith.constant 0 : index
    %c0_11 = arith.constant 0 : index
    %44 = vector.load %arg4[%c0_10, %c0_11] : memref<1x1xf32, #tpu.memory_space<vmem>>, vector<1x1xf32>
    %45 = vector.broadcast %44 : vector<1x1xf32> to vector<24x1xf32>
    %46 = arith.addf %43, %45 : vector<24x1xf32>
    %c0_12 = arith.constant 0 : index
    %c0_13 = arith.constant 0 : index
    %47 = vector.load %arg5[%c0_12, %c0_13] : memref<24x1xf32, #tpu.memory_space<vmem>>, vector<24x1xf32>
    tpu.vector_store %arg5[%c0_12, %c0_13], %46 {strides = array<i32>} : memref<24x1xf32, #tpu.memory_space<vmem>>, vector<24x1xf32>,
    return
  }
  func.func @transform_0(%arg0: i32, %arg1: memref<4xi32, #tpu.memory_space<smem>>) -> (i32, i32) {
    %c0_i32 = arith.constant 0 : i32
    %c0_i32_0 = arith.constant 0 : i32
    return %arg0, %c0_i32 : i32, i32
  }
  func.func @transform_1(%arg0: i32, %arg1: memref<4xi32, #tpu.memory_space<smem>>) -> (i32, i32) {
    %c0_i32 = arith.constant 0 : i32
    %c0_i32_0 = arith.constant 0 : i32
    %c0_i32_1 = arith.constant 0 : i32
    return %c0_i32, %c0_i32_0 : i32, i32
  }
  func.func @transform_2(%arg0: i32, %arg1: memref<4xi32, #tpu.memory_space<smem>>) -> (i32, i32) {
    %c0_i32 = arith.constant 0 : i32
    %c0_i32_0 = arith.constant 0 : i32
    %c0_i32_1 = arith.constant 0 : i32
    return %c0_i32, %c0_i32_0 : i32, i32
  }
  func.func @transform_3(%arg0: i32, %arg1: memref<4xi32, #tpu.memory_space<smem>>) -> (i32, i32) {
    %c0_i32 = arith.constant 0 : i32
    %c0_i32_0 = arith.constant 0 : i32
    return %arg0, %c0_i32 : i32, i32
  }
}

</mosaic_0001>

<bundles_post_ra>
// kernel: tpu_custom_call.1
= control target key start
LH: loop header
LB: loop body
LE: loop exit
PB: predicated region body
PF: predicated region fallthrough
CT: control target
= control target key end

     0   :  { %s924_s0 = inlined_call_operand.vmem [shape: s32[4], index: 0, kind: input, shape index: {}]   ;;  %s925_s1 = inlined_call_operand.vmem [shape: s32[37,4], index: 1, kind: input, shape index: {}]   ;;  %s926_s2 = inlined_call_operand.vmem [shape: f32[1,32], index: 2, kind: input, shape index: {}]   ;;  %s927_s4 = inlined_call_operand.vmem [shape: f32[37,1], index: 4, kind: output, shape index: {}]   ;;  %s928_s3 = inlined_call_operand.<no memory space> [shape: f32[1,1], index: 3, kind: input, shape index: {}]  }
   0x1   :  { %s9_s17 = sshll.u32 %s924_s0, 4  ;;  %v13_v0 = vstv %s928_s3  ;;  %s10_s17 = int_to_ptr.vmem [resolvable:$true] %s9_s17 }
   0x2   :  { %14 = vst [vmem:[#allocation4] sm:$0x1] %v13_v0  ;;  %s687_s20 = scalar_lea.vmem %s10_s17, 16  ;;  %p692_p1 = scmp.lt.s32.totalorder %s10_s17, %s10_s17 }
   0x3   :  { %p688_p0 = scmp.ne.s32.totalorder %s10_s17, %s687_s20  ;;  %p693_p2 = scmp.lt.s32.totalorder %s687_s20, %s687_s20 }
   0x5   :  { %p694_p3 = por %p693_p2, %p692_p1 }
   0x7   :  { %p695_p4 = pnand %p694_p3, %p688_p0 }
   0x9   :  { %698 = shalt.err (!%p695_p4)  }
   0xa   :  { %s789_s21 = smov [#allocation3]  }
   0xb   :  { %12 = dma.vmem_to_smem %s10_s17, 16, %s789_s21, [#allocation2] }
   0xc   :  { %743 = dma.done.wait [#allocation2], 16 }
   0xd   :  { %744 = vsyncadd [#allocation2], 4294967280 }
   0xe   :  { %16 = sfence }
   0xf   :  { %s825_s22 = smov 0   ;;  %s827_s0 = smov 0  }
  0x10   :  { %s829_s23 = smov 0  }
  0x11 LB: > { %s838_s3 = sadd.s32 4294967295, %s755_s23   ;;  %s840_s24 = sadd.s32 1, %s755_s23   ;;  %s755_s23 = sphi %s829_s23, %s932_s23   ;;  %s751_s0 = sphi %s827_s0, %s931_s0   ;;  %s747_s22 = sphi %s825_s22, %s930_s22  }
  0x12   : > { %s94_s25 = ssub.s32 %s755_s23, %s840_s24  ;;  %s97_s26 = sadd.s32 1, %s751_s0 }
  0x13   : > { %p95_p5 = scmp.eq.s32.totalorder %s94_s25, 0  ;;  %p107_p6 = scmp.ne.s32.totalorder %s751_s0, %s747_s22 }
  0x14   : > { %p108_p7 = scmp.eq.s32.totalorder %s838_s3, 1  ;;  %p560_p8 = scmp.ge.s32.totalorder %s755_s23, 1 }
  0x15   : > { %s848_s27 = scalar_select %p95_p5, %s751_s0, %s97_s26  }
  0x16   : > { %p850_p9 = por %p108_p7, %p107_p6  ;;  %p155_p10 = scmp.lt.s32.totalorder %s755_s23, 3 }
  0x18   : > { %p156_p11 = pnand %p560_p8, %p155_p10 }
  0x19   : > { %s855_s29 = smul.u32 (!%p156_p11), 3, %s838_s3  ;;  %s206_s30 = sld [smem:[#allocation3]] (!%p156_p11)  ;;  %v790_v1 = vmov (!%p156_p11), 0   ;;  %v791_v11 = vmov (!%p156_p11), 1   ;;  %v792_v18 = vmov (!%p156_p11), 2   ;;  %v793_v21 = vmov (!%p156_p11), 3  }
  0x1a   : > { %159 = sbr.rel (%p156_p11) target bundleno = 410 (0x19a), region = 32  ;;  %676 = vset.pattern.permute.xlu1 (!%p156_p11), %v790_v1  ;;  %675 = vset.pattern.permute.xlu0 (!%p156_p11), %v790_v1  ;;  %s562_s5 = sld [smem:[#allocation3 + $0x1]] (!%p156_p11)  ;;  %v201_v28 = vlaneseq (!%p156_p11)  ;;  %v565_v49 = vld [vmem:[%s926_s2] ss:$0 sm:$0xff] (!%p156_p11)  ;;  %vm308_vm11 = vcmask (!%p156_p11), 261120   ;;  %vm328_vm13 = vcmask (!%p156_p11), 7168  }
  0x1b   : > { %p187_p12 = scmp.lt.s32.totalorder (!%p156_p11), %s855_s29, 4  ;;  %s563_s11 = sld [smem:[#allocation3 + $0x2]] (!%p156_p11) }
  0x1c   : > { %s564_s12 = sld [smem:[#allocation3 + $0x3]] (!%p156_p11)  ;;  %v202_v31 = vand.u32 (!%p156_p11), 127, %v201_v28  ;;  %s179_s15 = sand.u32 (!%p156_p11), 1, %s747_s22  }
  0x1d   : > { %s580_s16 = smul.u32 (!%p156_p11), 24, %s179_s15 }
  0x1f   : > { %v207_v2 = vstv (!%p156_p11), %s206_s30  ;;  %s883_s17 = scalar_lea.vmem (!%p156_p11), [#allocation5], %s580_s16  }
  0x20   : > { %v227_v8 = vstv (!%p156_p11), %s562_s5 }
  0x21   : > { %s188_s6 = scalar_select %p187_p12, %s855_s29, 4  ;;  %v250_v14 = vstv %s563_s11 }
  0x22   : > { %v273_v17 = vstv %s564_s12  ;;  %s340_s18 = ssub.s32 (%p850_p9), 5, %s855_s29  ;;  %s579_s19 = smul.u32 (%p850_p9), 24, %s838_s3 }
  0x23   : > { %s561_s7 = sshll.u32 %s188_s6, 3  ;;  %p341_p13 = scmp.lt.s32.totalorder (%p850_p9), %s340_s18, 3 }
  0x24   : > { %s190_s10 = scalar_lea.vmem %s925_s1, %s561_s7  ;;  %s895_s22 = scalar_lea.vmem (%p850_p9), %s927_s4, %s579_s19  }
  0x25   : > { %v205_v3 = vld [vmem:[%s190_s10 + $0x10] sm:$0xff]  ;;  %v203_v4 = vld [vmem:[%s190_s10] sm:$0xff]  ;;  %v204_v5 = vld [vmem:[%s190_s10 + $0x8] sm:$0xff] }
  0x26   : > { %v210_v6 = vadd.s32 %v207_v2, %v205_v3  ;;  %v208_v7 = vadd.s32 %v207_v2, %v203_v4  ;;  %v209_v9 = vadd.s32 %v207_v2, %v204_v5  ;;  %v228_v10 = vadd.s32 %v227_v8, %v203_v4 }
  0x27   : > { %v230_v12 = vadd.s32 %v227_v8, %v205_v3  ;;  %v229_v13 = vadd.s32 %v227_v8, %v204_v5  ;;  %v251_v15 = vadd.s32 %v250_v14, %v203_v4  ;;  %v252_v16 = vadd.s32 %v250_v14, %v204_v5 }
  0x28   : > { %218 = vperm.xlu1 %676, %v210_v6   ;;  %212 = vperm.xlu0 %675, %v208_v7   ;;  %v253_v19 = vadd.s32 %v250_v14, %v205_v3  ;;  %v275_v20 = vadd.s32 %v273_v17, %v204_v5  ;;  %v274_v22 = vadd.s32 %v273_v17, %v203_v4  ;;  %v566_v6 = vld [vmem:[#allocation4] ss:$0 sm:$0xff] }
  0x29   : > { %v276_v23 = vadd.s32 %v273_v17, %v205_v3 }
  0x2c   : > { %677 = vset.pattern.permute.xlu1 %v791_v11  ;;  %215 = vperm.xlu0 %675, %v209_v9  }
  0x2d   : > { %232 = vperm.xlu1 %677, %v228_v10  }
  0x30   : > { %678 = vset.pattern.permute.xlu0 %v791_v11 }
  0x31   : > { %238 = vperm.xlu1 %677, %v230_v12   ;;  %235 = vperm.xlu0 %678, %v229_v13  }
  0x35   : > { %679 = vset.pattern.permute.xlu1 %v792_v18  ;;  %680 = vset.pattern.permute.xlu0 %v792_v18 }
  0x36   : > { %255 = vperm.xlu1 %679, %v251_v15   ;;  %258 = vperm.xlu0 %680, %v252_v16  }
  0x3a   : > { %261 = vperm.xlu1 %679, %v253_v19   ;;  %682 = vset.pattern.permute.xlu0 %v793_v21 }
  0x3b   : > { %281 = vperm.xlu0 %682, %v275_v20  }
  0x3e   : > { %681 = vset.pattern.permute.xlu1 %v793_v21 }
  0x3f   : > { %278 = vperm.xlu1 %681, %v274_v22  }
  0x43   : > { %284 = vperm.xlu1 %681, %v276_v23  }
  0xa7   : > { %v219_v24 = vpop.permute.xlu1 %218  ;;  %v213_v25 = vpop.permute.xlu0 %212 }
  0xa8   : > { %vm220_vm3 = vcmp.eq.s32.totalorder %v213_v25, %v202_v31  ;;  %vm222_vm8 = vcmp.eq.s32.totalorder %v219_v24, %v202_v31 }
  0xa9   : > { %v223_v39 = vsel %vm220_vm3, 1, %v790_v1  ;;  %v225_v52 = vsel %vm222_vm8, 1, %v790_v1 }
  0xab   : > { %v216_v26 = vpop.permute.xlu0 %215 }
  0xac   : > { %v233_v27 = vpop.permute.xlu1 %232  ;;  %vm221_vm1 = vcmp.eq.s32.totalorder %v216_v26, %v202_v31 }
  0xad   : > { %vm240_vm4 = vcmp.eq.s32.totalorder %v233_v27, %v202_v31  ;;  %v224_v35 = vsel %vm221_vm1, 1, %v790_v1 }
  0xae   : > { %v243_v40 = vsel %vm240_vm4, 1, %v790_v1 }
  0xaf   : > { %v246_v45 = vadd.s32 %v243_v40, %v223_v39 }
  0xb0   : > { %v239_v29 = vpop.permute.xlu1 %238  ;;  %v236_v30 = vpop.permute.xlu0 %235 }
  0xb1   : > { %vm241_vm0 = vcmp.eq.s32.totalorder %v236_v30, %v202_v31  ;;  %vm242_vm6 = vcmp.eq.s32.totalorder %v239_v29, %v202_v31 }
  0xb2   : > { %v244_v34 = vsel %vm241_vm0, 1, %v790_v1  ;;  %v245_v47 = vsel %vm242_vm6, 1, %v790_v1 }
  0xb3   : > { %v247_v37 = vadd.s32 %v244_v34, %v224_v35  ;;  %v248_v55 = vadd.s32 %v245_v47, %v225_v52 }
  0xb5   : > { %v256_v32 = vpop.permute.xlu1 %255  ;;  %v259_v33 = vpop.permute.xlu0 %258 }
  0xb6   : > { %vm264_vm2 = vcmp.eq.s32.totalorder %v259_v33, %v202_v31  ;;  %vm263_vm5 = vcmp.eq.s32.totalorder %v256_v32, %v202_v31 }
  0xb7   : > { %v267_v36 = vsel %vm264_vm2, 1, %v790_v1  ;;  %v266_v43 = vsel %vm263_vm5, 1, %v790_v1 }
  0xb8   : > { %v270_v42 = vadd.s32 %v267_v36, %v247_v37  ;;  %v269_v50 = vadd.s32 %v266_v43, %v246_v45 }
  0xb9   : > { %v262_v38 = vpop.permute.xlu1 %261 }
  0xba   : > { %v282_v41 = vpop.permute.xlu0 %281  ;;  %vm265_vm9 = vcmp.eq.s32.totalorder %v262_v38, %v202_v31 }
  0xbb   : > { %vm287_vm7 = vcmp.eq.s32.totalorder %v282_v41, %v202_v31  ;;  %v268_v53 = vsel %vm265_vm9, 1, %v790_v1 }
  0xbc   : > { %v290_v44 = vsel %vm287_vm7, 1, %v790_v1  ;;  %v271_v59 = vadd.s32 %v268_v53, %v248_v55 }
  0xbd   : > { %v293_v46 = vadd.s32 %v290_v44, %v270_v42 }
  0xbe   : > { %v279_v48 = vpop.permute.xlu1 %278 }
  0xbf   : > { %v296_v51 = vcvt.s32.f32 %v293_v46  ;;  %vm286_vm10 = vcmp.eq.s32.totalorder %v279_v48, %v202_v31 }
  0xc0   : > { %v289_v54 = vsel %vm286_vm10, 1, %v790_v1 }
  0xc1   : > { %v292_v56 = vadd.s32 %v289_v54, %v269_v50  ;;  %v306_v57 = vmul.f32 %v565_v49, %v296_v51 }
  0xc2   : > { %v285_v58 = vpop.permute.xlu1 %284 }
  0xc3   : > { %v295_v60 = vcvt.s32.f32 %v292_v56  ;;  %vm288_vm12 = vcmp.eq.s32.totalorder %v285_v58, %v202_v31  ;;  %v312_v61 = vsel %vm308_vm11, %v306_v57, 0.0 }
  0xc4   : > { %v291_v62 = vsel %vm288_vm12, 1, %v790_v1  ;;  %313 = vadd.xlane.f32.xlu0 %v312_v61 }
  0xc5   : > { %v294_v63 = vadd.s32 %v291_v62, %v271_v59  ;;  %v305_v0 = vmul.f32 %v565_v49, %v295_v60 }
  0xc7   : > { %v297_v2 = vcvt.s32.f32 %v294_v63  ;;  %v309_v3 = vsel %vm308_vm11, %v305_v0, 0.0 }
  0xc8   : > { %310 = vadd.xlane.f32.xlu1 %v309_v3 }
  0xc9   : > { %v307_v4 = vmul.f32 %v565_v49, %v297_v2 }
  0xcb   : > { %v315_v5 = vsel %vm308_vm11, %v307_v4, 0.0 }
  0xcc   : > { %316 = vadd.xlane.f32.xlu0 %v315_v5 }
 0x151   : > { %v314_v7 = vpop.xlane.xlu0 %313 }
 0x152   : > { %v326_v8 = vadd.f32 %v566_v6, %v314_v7 }
 0x154   : > { %330 = vst.msk [vmem:[%s883_s17 + $0x8] sm:$0xff] %vm328_vm13, %v326_v8 }
 0x155   : > { %v311_v1 = vpop.xlane.xlu1 %310 }
 0x156   : > { %v325_v9 = vadd.f32 %v566_v6, %v311_v1  ;;  %338 = sbr.rel (!%p850_p9) target bundleno = 410 (0x19a), region = 36 }
 0x158   : > { %329 = vst.msk [vmem:[%s883_s17] sm:$0xff] %vm328_vm13, %v325_v9 }
 0x159   : > { %v317_v10 = vpop.xlane.xlu0 %316 }
 0x15a   : > { %v327_v11 = vadd.f32 %v566_v6, %v317_v10 }
 0x15c   : > { %331 = vst.msk [vmem:[%s883_s17 + $0x10] sm:$0xff] %vm328_vm13, %v327_v11 }
 0x15d   : > { %s934_s18 = smov (!%p341_p13, %s340_s18), 3 }
 0x15e   : > { %s567_s23 = sshll.u32 %s934_s18, 7 }
 0x15f   : > { %p570_p0 = scmp.eq.s32.totalorder %s567_s23, 0 }
 0x160   : > { %683 = sdivrem.u32 (!%p570_p0), %s934_s18, 3 }
 0x161   : > { %349 = sbr.rel (%p570_p0) target bundleno = 410 (0x19a), region = 40 }
 0x169   : > { %s901_s25 = spop.drf %683 }
 0x16a   : > { %p571_p1 = scmp.le.s32.totalorder %s901_s25, 0 }
 0x16b   : > { %s757_s3 = smov (!%p571_p1), %s895_s22   ;;  %s761_s26 = smov (!%p571_p1), %s883_s17  }
 0x16c   : > { %513 = sbr.rel (%p571_p1) target bundleno = 381 (0x17d), region = 116  ;;  %s765_s28 = smov (!%p571_p1), 0  }
 0x16d   : > { %s769_s29 = smov (!%p571_p1), 0  }
 0x173 LB: >> { %v417_v12 = vld [vmem:[%s763_s26] sm:$0xff]  ;;  %v419_v13 = vld [vmem:[%s763_s26 + $0x8] sm:$0xff]  ;;  %v421_v14 = vld [vmem:[%s763_s26 + $0x10] sm:$0xff]  ;;  %s423_s30 = sadd.s32 1, %s767_s28  ;;  %s411_s29 = sadd.s32 1, %s771_s29   ;;  %s771_s29 = sphi %s769_s29, %s411_s29   ;;  %s767_s28 = sphi %s765_s28, %s766_s28   ;;  %s763_s26 = sphi %s761_s26, %s428_s26   ;;  %s759_s3 = sphi %s757_s3, %s429_s3  }
 0x174   : >> { %418 = vst [vmem:[%s759_s3] sm:$0xff] %v417_v12  ;;  %420 = vst [vmem:[%s759_s3 + $0x8] sm:$0xff] %v419_v13  ;;  %p424_p2 = scmp.ge.s32.totalorder %s423_s30, %s901_s25  ;;  %p410_p3 = scmp.ge.s32.totalorder %s411_s29, %s901_s25 }
 0x175   : >> { %422 = vst [vmem:[%s759_s3 + $0x10] sm:$0xff] %v421_v14 }
 0x176   : >> { %s936_s30 = smov (%p424_p2, %s423_s30), 0  ;;  %413 = sbr.rel (!%p410_p3) target bundleno = 371 (0x173), region = 122 }
 0x177   : >> { %s426_s5 = smul.u32 24, %s936_s30  ;;  %s766_s28 = smov %s936_s30  }
 0x179   : >> { %s428_s26 = scalar_lea.vmem %s883_s17, %s426_s5 [#allocation5]   ;;  %s429_s3 = scalar_lea.vmem %s895_s22, %s426_s5  }
 0x17d PF: > { %685 = sdivrem.u32 %s934_s18, 3 }
 0x17e   : > { %s572_s6 = smul.u32 24, %s901_s25 }
 0x180   : > { %s434_s7 = scalar_lea.vmem %s883_s17, %s572_s6 [#allocation5]   ;;  %s436_s8 = scalar_lea.vmem %s895_s22, %s572_s6  }
 0x186   : > { %s686_s9 = spop.drf %685 }
 0x187   : > { %p574_p4 = scmp.le.s32.totalorder %s686_s9, 0 }
 0x188   : > { %s773_s10 = smov (!%p574_p4), %s436_s8   ;;  %s777_s11 = smov (!%p574_p4), %s434_s7  }
 0x189   : > { %527 = sbr.rel (%p574_p4) target bundleno = 410 (0x19a), region = 127  ;;  %s781_s12 = smov (!%p574_p4), 0  }
 0x18a   : > { %s785_s13 = smov (!%p574_p4), 0  }
 0x190 LB: >> { %v446_v15 = vld [vmem:[%s779_s11] sm:$0xff]  ;;  %s448_s14 = sadd.s32 1, %s783_s12  ;;  %s440_s13 = sadd.s32 1, %s787_s13   ;;  %s787_s13 = sphi %s785_s13, %s440_s13   ;;  %s783_s12 = sphi %s781_s12, %s782_s12   ;;  %s779_s11 = sphi %s777_s11, %s453_s11   ;;  %s775_s10 = sphi %s773_s10, %s454_s10  }
 0x191   : >> { %447 = vst [vmem:[%s775_s10] sm:$0xff] %v446_v15  ;;  %p449_p5 = scmp.ge.s32.totalorder %s448_s14, %s686_s9  ;;  %p439_p6 = scmp.ge.s32.totalorder %s440_s13, %s686_s9 }
 0x193   : >> { %s938_s14 = smov (%p449_p5, %s448_s14), 0  ;;  %442 = sbr.rel (!%p439_p6) target bundleno = 400 (0x190), region = 133 }
 0x194   : >> { %s575_s15 = sshll.u32 %s938_s14, 3  ;;  %s782_s12 = smov %s938_s14  }
 0x195   : >> { %s453_s11 = scalar_lea.vmem %s434_s7, %s575_s15 [#allocation5]   ;;  %s454_s10 = scalar_lea.vmem %s436_s8, %s575_s15  }
 0x19a PF: > { %p19_p7 = scmp.ge.s32.totalorder %s840_s24, 4   ;;  %s930_s22 = smov %s751_s0 }
 0x19b   : > { %s931_s0 = smov %s848_s27  ;;  %s932_s23 = smov %s840_s24 }
 0x19c   :  { %21 = sbr.rel (!%p19_p7) target bundleno = 17 (0x11), region = 144 }

</bundles_post_ra>
